<compile_context>
chip_gen: v7x
topology: tpu7x:2x2x1
jax: 0.10.0
libtpu: 0.0.40
codegen_flags: <defaults>
</compile_context>

<pallas_src>
import functools

import jax
import jax.numpy as jnp
from jax.experimental import pallas as pl
from jax.experimental.pallas import tpu as pltpu


# ---------------------------------------------------------------------------
# Kernel
# ---------------------------------------------------------------------------
def _select_kernel(x_ref, o_ref, *, runs):
    """Copy selected feature columns into the output with a single store.

    `runs` is a static tuple of (start, length) contiguous column runs, already
    shifted into the DMA'd feature window, so every slice below is static.
    """
    if len(runs) == 1:
        s, l = runs[0]
        o_ref[...] = x_ref[:, s:s + l]
    else:
        x = x_ref[...]
        o_ref[...] = jnp.concatenate([x[:, s:s + l] for s, l in runs], axis=-1)


# ---------------------------------------------------------------------------
# Helpers
# ---------------------------------------------------------------------------
def _sublane_multiple(itemsize):
    # f32 -> 8, bf16 -> 16, int8/fp8 -> 32 (sub-32-bit dtypes pack along sublanes).
    return 8 * max(1, 4 // int(itemsize))


def _roundup(x, m):
    return ((x + m - 1) // m) * m


def _coalesce(indices):
    """Merge consecutive indices into (start, length) runs (preserves order)."""
    runs = []
    start = prev = indices[0]
    length = 1
    for i in indices[1:]:
        if i == prev + 1:
            length += 1
        else:
            runs.append((start, length))
            start, length = i, 1
        prev = i
    runs.append((start, length))
    return tuple(runs)


# ---------------------------------------------------------------------------
# Wrapper
# ---------------------------------------------------------------------------
def baseline_forward(x, label_index=None, *, target_block_bytes=4 << 20):
    """Pallas implementation of Baseline.forward.

    x: (B, S, F) array.
    label_index: None | int | list[int]  (static Python value).
    target_block_bytes: target padded size of one input block in VMEM.
    """
    if label_index is None:
        # Identity: return the input unchanged -- zero HBM traffic.
        return x

    B, S, F = x.shape
    if isinstance(label_index, (list, tuple)):
        raw = [int(i) for i in label_index]
    else:
        raw = [int(label_index)]
    if not raw:
        raise ValueError("label_index list must be non-empty")
    for i in raw:
        if not (-F <= i < F):
            raise IndexError(f"label_index {i} out of range for feature dim {F}")
    indices = [i % F for i in raw]
    K = len(indices)

    itemsize = jnp.dtype(x.dtype).itemsize
    R = B * S
    x2 = x.reshape(R, F)  # contiguous reshape: no data movement

    # ---- feature (lane) window: narrow the DMA'd slab when possible ---------
    min_idx, max_idx = min(indices), max(indices)
    if F > 128:
        g_lo, g_hi = min_idx // 128, max_idx // 128
        if g_lo == g_hi:
            # All selected columns live in one 128-lane group (covers K=1 and
            # label_index=-1): DMA only that group.
            W, feat_block, col_off = 128, g_lo, g_lo * 128
        else:
            # Fall back to a 128-aligned prefix covering the highest index.
            prefix = (g_hi + 1) * 128
            W = prefix if prefix < F else F
            feat_block, col_off = 0, 0
    else:
        W, feat_block, col_off = F, 0, 0

    runs = _coalesce([i - col_off for i in indices])

    # ---- row block: padding-aware VMEM budget --------------------------------
    mult = _sublane_multiple(itemsize)
    padded_W = _roundup(W, 128)
    padded_K = _roundup(K, 128)
    bytes_in_row = padded_W * itemsize
    bytes_out_row = padded_K * itemsize
    bytes_per_row = bytes_in_row + bytes_out_row   # one buffer of in + out

    rows_budget = max(1, target_block_bytes // bytes_in_row)
    # Guard against the tiny-tile perf cliff for very wide, non-narrowable F.
    rows_budget = max(rows_budget, 128)
    # Hard cap: double-buffered (in + out) footprint stays within ~24 MiB so it
    # fits every generation's scoped-VMEM budget with headroom.
    hard_cap_bytes = 24 << 20
    rows_cap = max(mult, hard_cap_bytes // (2 * bytes_per_row))
    rows_budget = min(rows_budget, rows_cap)
    rows_budget = max(mult, (rows_budget // mult) * mult)

    if R <= rows_budget:
        if R >= 2 * mult:
            # Split into (at least) 2 row tiles so the "parallel" axis can
            # shard across both v7x TensorCores.  No effect on v5e/v6e.
            r_tile = max(mult, _roundup(-(-R // 2), mult))
        else:
            r_tile = R            # single tiny block == full row extent
    else:
        r_tile = rows_budget      # multiple of the sublane packing factor

    grid = (pl.cdiv(R, r_tile),)

    footprint = 2 * r_tile * bytes_per_row              # double-buffered in+out
    vmem_limit = int(min(max(footprint + (4 << 20), 16 << 20), 48 << 20))

    kernel = functools.partial(_select_kernel, runs=runs)

    out2 = pl.pallas_call(
        kernel,
        out_shape=jax.ShapeDtypeStruct((R, K), x.dtype),
        grid_spec=pltpu.PrefetchScalarGridSpec(
            num_scalar_prefetch=0,
            grid=grid,
            in_specs=[pl.BlockSpec((r_tile, W), lambda r, fb=feat_block: (r, fb))],
            out_specs=pl.BlockSpec((r_tile, K), lambda r: (r, 0)),
        ),
        compiler_params=pltpu.CompilerParams(
            # Row tiles are independent -> megacore sharding on v7x.
            dimension_semantics=("parallel",),
            vmem_limit_bytes=vmem_limit,
        ),
        cost_estimate=pl.CostEstimate(
            flops=0,
            transcendentals=0,
            bytes_accessed=R * (W + K) * itemsize,
        ),
    )(x2)
    return out2.reshape(B, S, K)


# ---------------------------------------------------------------------------
# Pure-JAX reference (mirrors the PyTorch forward exactly)
# ---------------------------------------------------------------------------
def baseline_ref(x, label_index=None):
    if label_index is None:
        return x
    if isinstance(label_index, (list, tuple)):
        return jnp.concatenate(
            [x[:, :, i][..., None] for i in label_index], axis=-1
        )
    return x[:, :, label_index][..., None]


if __name__ == "__main__":
    key = jax.random.PRNGKey(0)
    B, S, F = 2, 8, 32
    x = jax.random.normal(key, (B, S, F), dtype=jnp.float32)

    # Case 1: label_index is None -> identity (no kernel, no copy).
    out_none = jax.block_until_ready(baseline_forward(x, None))
    assert out_none.shape == (B, S, F)
    assert jnp.array_equal(out_none, baseline_ref(x, None))

    # Case 2: single int label_index.
    out_int = jax.block_until_ready(baseline_forward(x, 5))
    assert out_int.shape == (B, S, 1)
    assert jnp.array_equal(out_int, baseline_ref(x, 5))

    # Case 3: list of label indices (non-contiguous -> multi-run concat).
    idx_list = [3, 7, 11]
    out_list = jax.block_until_ready(baseline_forward(x, idx_list))
    assert out_list.shape == (B, S, len(idx_list))
    assert jnp.array_equal(out_list, baseline_ref(x, idx_list))

    # Case 4: negative index (same semantics as torch).
    out_neg = jax.block_until_ready(baseline_forward(x, -1))
    assert jnp.array_equal(out_neg, baseline_ref(x, -1))

    # Case 5: contiguous indices are coalesced into one slice copy.
    out_run = jax.block_until_ready(baseline_forward(x, [3, 4, 5]))
    assert jnp.array_equal(out_run, baseline_ref(x, [3, 4, 5]))

    # Case 6: wide feature axis, indices in group 0 -> reads only 128 of 256 cols.
    key2 = jax.random.PRNGKey(0)
    x_wide = jax.random.normal(key2, (B, S, 256), dtype=jnp.float32)
    out_wide = jax.block_until_ready(baseline_forward(x_wide, [3, 100]))
    assert out_wide.shape == (B, S, 2)
    assert jnp.array_equal(out_wide, baseline_ref(x_wide, [3, 100]))

    # Case 7: label_index = -1 on wide F -> 128-aligned *window* in group 1.
    out_last = jax.block_until_ready(baseline_forward(x_wide, -1))
    assert jnp.array_equal(out_last, baseline_ref(x_wide, -1))

    # Case 8: indices spanning 128-lane groups -> prefix narrowing (256 of 384).
    x_span = jax.random.normal(key2, (B, S, 384), dtype=jnp.float32)
    out_span = jax.block_until_ready(baseline_forward(x_span, [3, 200]))
    assert jnp.array_equal(out_span, baseline_ref(x_span, [3, 200]))

    # Case 9: multi-block row tiling with a ragged last block
    # (R = 400 rows, 128-row tiles -> 4 grid steps, last one partial).
    x_long = jax.random.normal(key2, (4, 100, 32), dtype=jnp.float32)
    out_long = jax.block_until_ready(
        baseline_forward(x_long, [1, 30], target_block_bytes=16384)
    )
    assert out_long.shape == (4, 100, 2)
    assert jnp.array_equal(out_long, baseline_ref(x_long, [1, 30]))

    print("KERNEL_OK")
</pallas_src>

<mosaic_0001>
module attributes {stable_mosaic.version = 11 : i64} {
  func.func @_select_kernel(%arg0: i32, %arg1: memref<8x32xf32, #tpu.memory_space<vmem>>, %arg2: memref<8x1xf32, #tpu.memory_space<vmem>>) attributes {dimension_semantics = [#tpu.dimension_semantics<parallel>], iteration_bounds = array<i64: 2>, scalar_prefetch = 0 : i64, scratch_operands = 0 : i64, tpu.core_type = #tpu.core_type<tc>, window_params = [{transform_indices = @transform_0, window_bounds = array<i64: 8, 32>}, {transform_indices = @transform_1, window_bounds = array<i64: 8, 1>}]} {
    %c0 = arith.constant 0 : index
    %c5 = arith.constant 5 : index
    %0 = vector.load %arg1[%c0, %c5] : memref<8x32xf32, #tpu.memory_space<vmem>>, vector<8x1xf32>
    %c0_0 = arith.constant 0 : index
    %c0_1 = arith.constant 0 : index
    %1 = vector.load %arg2[%c0_0, %c0_1] : memref<8x1xf32, #tpu.memory_space<vmem>>, vector<8x1xf32>
    tpu.vector_store %arg2[%c0_0, %c0_1], %0 {strides = array<i32>} : memref<8x1xf32, #tpu.memory_space<vmem>>, vector<8x1xf32>,
    return
  }
  func.func @transform_0(%arg0: i32) -> (i32, i32) {
    %c0_i32 = arith.constant 0 : i32
    %c0_i32_0 = arith.constant 0 : i32
    return %arg0, %c0_i32 : i32, i32
  }
  func.func @transform_1(%arg0: i32) -> (i32, i32) {
    %c0_i32 = arith.constant 0 : i32
    %c0_i32_0 = arith.constant 0 : i32
    return %arg0, %c0_i32 : i32, i32
  }
}

</mosaic_0001>

<bundles_post_ra>
// kernel: tpu_custom_call.1
= control target key start
LH: loop header
LB: loop body
LE: loop exit
PB: predicated region body
PF: predicated region fallthrough
CT: control target
= control target key end

     0   :  { %6 = vsyncpa [#allocation3], 0  ;;  %s439_s0 = inlined_call_operand.hbm [shape: f32[16,32], index: 0, kind: input, shape index: {}]   ;;  %s440_s1 = inlined_call_operand.vmem [shape: f32[16,1], index: 1, kind: output, shape index: {}]  }
   0x1   :  { %8 = vsyncpa [#allocation3 + $0x1], 0  ;;  %s332_s6 = smov 0   ;;  %s334_s7 = smov 0  }
   0x2   :  { %s336_s8 = smov 0   ;;  %s338_s9 = smov 0  }
   0x3 LB: > { %s351_s10 = sadd.s32 4294967295, %s318_s9   ;;  %s354_s11 = sadd.s32 1, %s318_s9   ;;  %s318_s9 = sphi %s338_s9, %s448_s9   ;;  %s314_s8 = sphi %s336_s8, %s447_s8   ;;  %s310_s7 = sphi %s334_s7, %s446_s7   ;;  %s306_s6 = sphi %s332_s6, %s445_s6  }
   0x4   : > { %s18_s12 = ssub.s32 %s318_s9, %s354_s11  ;;  %s21_s13 = sadd.s32 1, %s314_s8 }
   0x5   : > { %p19_p0 = scmp.eq.s32.totalorder %s18_s12, 0  ;;  %p28_p1 = scmp.ne.s32.totalorder %s314_s8, %s310_s7 }
   0x6   : > { %p29_p2 = scmp.eq.s32.totalorder %s318_s9, 0  ;;  %p34_p3 = scmp.ne.s32.totalorder %s310_s7, %s306_s6 }
   0x7   : > { %s364_s14 = scalar_select %p19_p0, %s314_s8, %s21_s13  }
   0x8   : > { %p30_p4 = por %p29_p2, %p28_p1  ;;  %p35_p5 = scmp.eq.s32.totalorder %s351_s10, 0 }
   0x9   : > { %p220_p6 = scmp.lt.s32.totalorder %s318_s9, 2  ;;  %s84_s16 = sand.u32 1, %s314_s8  }
   0xa   : > { %p368_p7 = por %p35_p5, %p34_p3  ;;  %s207_s17 = sshll.u32 %s84_s16, 3 }
   0xb   : > { %s208_s18 = sshll.u32 %s318_s9, 7  ;;  %s88_s22 = scalar_lea.vmem [#allocation2], %s207_s17 }
   0xc   : > { %s377_s21 = scalar_lea.hbm %s439_s0, %s208_s18  ;;  %s95_s23 = sshll.u32 %s88_s22, 4  ;;  %s379_s23 = int_to_ptr.vmem [resolvable:$true] %s95_s23 }
   0xd   : > { %p381_p8 = pnand %p220_p6, %p30_p4  ;;  %s85_s25 = scalar_lea.sflag [#allocation3], %s84_s16 }
   0xe   : > { %s254_s26 = scalar_lea.hbm %s377_s21, 128  ;;  %s259_s29 = scalar_lea.hbm %s439_s0, 256 }
   0xf   : > { %p255_p11 = scmp.ne.s32.totalorder %s377_s21, %s254_s26  ;;  %p256_p12 = pneg %p381_p8 }
  0x10   : > { %p260_p1 = scmp.lt.u32.totalorder %s377_s21, %s439_s0  ;;  %p261_p2 = scmp.lt.u32.totalorder %s259_s29, %s254_s26 }
  0x11   : > { %p257_p13 = pnand %p256_p12, %p255_p11  ;;  %p263_p4 = scmp.lt.u32.totalorder %s254_s26, %s377_s21 }
  0x12   : > { %p262_p3 = por %p261_p2, %p260_p1 }
  0x13   : > { %p258_p0 = pneg %p257_p13 }
  0x14   : > { %p264_p5 = por %p263_p4, %p262_p3 }
  0x16   : > { %p265_p6 = pnand %p264_p5, %p258_p0 }
  0x18   : > { %268 = shalt.err (!%p265_p6)
}
  0x19   : > { %s269_s3 = scalar_lea.vmem %s379_s23, 128  ;;  %s320_s4 = smov [#allocation2]  }
  0x1a   : > { %p270_p11 = scmp.ne.s32.totalorder %s379_s23, %s269_s3  ;;  %s274_s5 = sshll.u32 %s320_s4, 4  ;;  %s275_s5 = int_to_ptr.vmem [resolvable:$false] %s274_s5 }
  0x1b   : > { %s276_s6 = scalar_lea.vmem %s275_s5, 256  ;;  %p277_p10 = scmp.lt.s32.totalorder %s379_s23, %s275_s5 }
  0x1c   : > { %p272_p13 = pnand %p270_p11, %p256_p12  ;;  %p278_p1 = scmp.lt.s32.totalorder %s276_s6, %s269_s3 }
  0x1e   : > { %p273_p9 = pneg %p272_p13  ;;  %p279_p2 = por %p278_p1, %p277_p10 }
  0x20   : > { %p280_p3 = pnand %p279_p2, %p273_p9 }
  0x22   : > { %283 = shalt.err (!%p280_p3)
}
  0x23   : > { %219 = dma.hbm_to_vmem [thread:$0]  (!%p381_p8), %s377_s21, 128, %s379_s23, %s85_s25  }
  0x24   : > { %p443_p0 = scmp.lt.s32.totalorder %s318_s9, 3  ;;  %p444_p4 = scmp.ge.s32.totalorder %s318_s9, 1 }
  0x26   : > { %p101_p12 = pnand %p444_p4, %p443_p0 }
  0x27   : > { %s106_s12 = sand.u32 (!%p101_p12), 1, %s310_s7  }
  0x28   : > { %104 = sbr.rel (%p101_p12) target bundleno = 165 (0xa5), region = 24  ;;  %s210_s13 = sshll.u32 (!%p101_p12), %s106_s12, 3 }
  0x29   : > { %s107_s16 = scalar_lea.sflag (!%p101_p12), [#allocation3], %s106_s12  ;;  %s110_s17 = scalar_lea.vmem (!%p101_p12), [#allocation2], %s210_s13 }
  0x2f   : > { %301 = dma.done.wait (%p368_p7), %s107_s16, 128  }
  0x30   : > { %303 = vsyncadd (%p368_p7), %s107_s16, 4294967168  ;;  %v132_v0 = vld [vmem:[%s110_s17] sm:$0xff]  ;;  %s321_s18 = smov 123   ;;  %p128_p8 = scmp.lt.s32.totalorder %s351_s10, 1  ;;  %vm137_vm0 = vcmask 7168  }
  0x31   : > { %134 = vrot.lane.b32.xlu0 %v132_v0, %s321_s18 }
  0x32   : > { %s450_s10 = smov (!%p128_p8, %s351_s10), 1 }
  0x33   : > { %s211_s9 = sshll.u32 %s450_s10, 3 }
  0x34   : > { %s131_s21 = scalar_lea.vmem %s440_s1, %s211_s9 }
  0xa3   : > { %v135_v1 = vpop.permute.xlu0 %134 }
  0xa4   : > { %138 = vst.msk [vmem:[%s131_s21] sm:$0xff] %vm137_vm0, %v135_v1 }
  0xa5 PF: > { %p11_p7 = scmp.ge.s32.totalorder %s354_s11, 4   ;;  %s445_s6 = smov %s310_s7 }
  0xa6   : > { %s446_s7 = smov %s314_s8  ;;  %s447_s8 = smov %s364_s14 }
  0xa7   : > { %s448_s9 = smov %s354_s11  ;;  %13 = sbr.rel (!%p11_p7) target bundleno = 3 (0x3), region = 64 }
  0xae   :  { %158 = vsyncpa [#allocation3], 1 }
  0xaf   :  { %160 = vsyncpa [#allocation3 + $0x1], 1 }

</bundles_post_ra>
